<compile_context>
chip_gen: v7x
topology: tpu7x:2x2x1
jax: 0.10.0
libtpu: 0.0.40
codegen_flags: <defaults>
</compile_context>

<pallas_src>
import functools

import jax
import jax.numpy as jnp
from jax.experimental import pallas as pl
from jax.experimental.pallas import tpu as pltpu


def _dilated_circ_conv_kernel(x_ref, w_ref, b_ref, o_ref, *,
                              n_adj, dilation, compute_dtype):
    """One batch element per grid step.

    x_ref: (C_in, N)          unpadded input slab (VMEM)
    w_ref: (C_out, K * C_in)  weight, tap-major / channel-minor rows (VMEM)
    b_ref: (C_out, 1)         bias (VMEM)
    o_ref: (C_out, N)         output slab (VMEM)
    """
    x = x_ref[...]
    n = x.shape[-1]
    pad = n_adj * dilation
    n_taps = 2 * n_adj + 1

    # Circular halo rebuilt in VMEM from the resident tile (no HBM pad copy).
    if pad:
        xpad = jnp.concatenate([x[:, n - pad:], x, x[:, :pad]], axis=-1)
    else:
        xpad = x

    # im2col slab built ONCE per tile: row (k*C_in + c) = xpad[c, k*dil + :],
    # matching the tap-major / channel-minor weight layout from the wrapper.
    col = jnp.concatenate(
        [xpad[:, k * dilation:k * dilation + n] for k in range(n_taps)],
        axis=0)                                           # (K*C_in, N)

    w = w_ref[...]
    if compute_dtype is not None:                         # bf16 path for v6e/v7x
        col = col.astype(compute_dtype)
        w = w.astype(compute_dtype)

    # Single 2-D MXU matmul per step, f32 accumulation.
    acc = jnp.dot(w, col, preferred_element_type=jnp.float32)   # (C_out, N)
    acc = acc + b_ref[...]                                       # bias, bcast over N
    o_ref[...] = acc.astype(o_ref.dtype)


def dilated_circ_conv(x, weight, bias, *, n_adj=4, dilation=1,
                      compute_dtype=None):
    """Forward pass of DilatedCircConv.

    x:      (B, C_in, N)      float32
    weight: (C_out, C_in, K)  float32, K = 2*n_adj + 1
    bias:   (C_out,)          float32
    returns (B, C_out, N)     float32
    """
    B, C_in, N = x.shape
    C_out, C_in_w, K = weight.shape
    assert C_in_w == C_in
    assert K == 2 * n_adj + 1
    pad = n_adj * dilation
    assert pad <= N, "circular pad must not exceed the sequence length"

    # Pre-layout parameters once (wrapper-side, free): tap-major rows so the
    # kernel never extracts taps from the lane dim.
    # w2[o, k*C_in + c] == weight[o, c, k]
    w2 = jnp.transpose(weight, (0, 2, 1)).reshape(C_out, K * C_in)
    b2 = bias.reshape(C_out, 1)

    kernel = functools.partial(
        _dilated_circ_conv_kernel,
        n_adj=n_adj, dilation=dilation, compute_dtype=compute_dtype)

    # Explicit VMEM budget: per-step blocks (double-buffered) + resident
    # params + in-kernel intermediates, with headroom; capped at 32 MiB so the
    # same setting is valid on v5e / v6e / v7x.
    itemsize = jnp.dtype(x.dtype).itemsize
    block_bytes = (
        2 * C_in * N * itemsize              # pipelined input blocks
        + 2 * C_out * N * itemsize           # pipelined output blocks
        + C_out * K * C_in * itemsize        # weight (VMEM-resident)
        + C_out * itemsize                   # bias
        + C_in * (N + 2 * pad) * 4           # xpad intermediate (f32)
        + K * C_in * N * 4                   # im2col slab (f32)
        + C_out * N * 4)                     # f32 accumulator
    vmem_limit = int(min(max(4 * block_bytes, 4 * 1024 * 1024),
                         32 * 1024 * 1024))

    out = pl.pallas_call(
        kernel,
        out_shape=jax.ShapeDtypeStruct((B, C_out, N), x.dtype),
        grid=(B,),
        in_specs=[
            pl.BlockSpec((None, C_in, N), lambda b: (b, 0, 0)),      # x slab
            pl.BlockSpec((C_out, K * C_in), lambda b: (0, 0)),       # weight
            pl.BlockSpec((C_out, 1), lambda b: (0, 0)),              # bias
        ],
        out_specs=pl.BlockSpec((None, C_out, N), lambda b: (b, 0, 0)),
        compiler_params=pltpu.CompilerParams(
            dimension_semantics=("parallel",),
            vmem_limit_bytes=vmem_limit),
    )(x, w2, b2)
    return out


def _reference(x, weight, bias, *, n_adj=4, dilation=1):
    """Plain-JAX reference matching torch.nn.Conv1d semantics on circular pad."""
    pad = n_adj * dilation
    xpad = jnp.concatenate([x[..., -pad:], x, x[..., :pad]], axis=2) if n_adj else x
    out = jax.lax.conv_general_dilated(
        xpad, weight,
        window_strides=(1,),
        padding="VALID",
        rhs_dilation=(dilation,),
        dimension_numbers=("NCH", "OIH", "NCH"),
    )
    return out + bias.reshape(1, -1, 1)


if __name__ == "__main__":
    # Module config (DilatedCircConv defaults): n_adj=4 -> kernel_size=9.
    B, state_dim, out_state_dim, N = 2, 4, 8, 16
    n_adj = 4
    K = 2 * n_adj + 1

    key = jax.random.PRNGKey(0)
    kx, kw, kb = jax.random.split(key, 3)
    x = jax.random.normal(kx, (B, state_dim, N), dtype=jnp.float32)
    weight = jax.random.normal(kw, (out_state_dim, state_dim, K),
                               dtype=jnp.float32) * 0.1
    bias = jax.random.normal(kb, (out_state_dim,), dtype=jnp.float32) * 0.1

    for dilation in (1, 2):
        out = dilated_circ_conv(x, weight, bias, n_adj=n_adj, dilation=dilation)
        out = jax.block_until_ready(out)
        ref = _reference(x, weight, bias, n_adj=n_adj, dilation=dilation)
        assert out.shape == (B, out_state_dim, N)
        assert jnp.allclose(out, ref, atol=1e-4, rtol=1e-4), (
            f"mismatch at dilation={dilation}: "
            f"{jnp.max(jnp.abs(out - ref))}")

    print("KERNEL_OK")
</pallas_src>

<mosaic_0001>
module attributes {stable_mosaic.version = 11 : i64} {
  func.func @_dilated_circ_conv_kernel(%arg0: i32, %arg1: memref<1x4x16xf32, #tpu.memory_space<vmem>>, %arg2: memref<8x36xf32, #tpu.memory_space<vmem>>, %arg3: memref<8x1xf32, #tpu.memory_space<vmem>>, %arg4: memref<1x8x16xf32, #tpu.memory_space<vmem>>) attributes {dimension_semantics = [#tpu.dimension_semantics<parallel>], iteration_bounds = array<i64: 2>, scalar_prefetch = 0 : i64, scratch_operands = 0 : i64, tpu.core_type = #tpu.core_type<tc>, window_params = [{transform_indices = @transform_0, window_bounds = array<i64: 1, 4, 16>}, {pipeline_mode = #tpu.pipeline_mode<synchronous>, transform_indices = @transform_1, window_bounds = array<i64: 8, 36>}, {pipeline_mode = #tpu.pipeline_mode<synchronous>, transform_indices = @transform_2, window_bounds = array<i64: 8, 1>}, {transform_indices = @transform_3, window_bounds = array<i64: 1, 8, 16>}]} {
    %c0 = arith.constant 0 : index
    %c0_0 = arith.constant 0 : index
    %c0_1 = arith.constant 0 : index
    %0 = vector.load %arg1[%c0, %c0_0, %c0_1] : memref<1x4x16xf32, #tpu.memory_space<vmem>>, vector<1x4x16xf32>
    %1 = vector.shape_cast %0 : vector<1x4x16xf32> to vector<4x16xf32>
    %2 = vector.extract_strided_slice %1 {offsets = [0, 12], sizes = [4, 4], strides = [1, 1]} : vector<4x16xf32> to vector<4x4xf32>
    %3 = vector.extract_strided_slice %1 {offsets = [0, 0], sizes = [4, 4], strides = [1, 1]} : vector<4x16xf32> to vector<4x4xf32>
    %4 = tpu.concatenate %2, %1, %3 in 1 : vector<4x4xf32>, vector<4x16xf32>, vector<4x4xf32> -> vector<4x24xf32>
    %5 = vector.extract_strided_slice %4 {offsets = [0, 0], sizes = [4, 16], strides = [1, 1]} : vector<4x24xf32> to vector<4x16xf32>
    %6 = vector.extract_strided_slice %4 {offsets = [0, 1], sizes = [4, 16], strides = [1, 1]} : vector<4x24xf32> to vector<4x16xf32>
    %7 = vector.extract_strided_slice %4 {offsets = [0, 2], sizes = [4, 16], strides = [1, 1]} : vector<4x24xf32> to vector<4x16xf32>
    %8 = vector.extract_strided_slice %4 {offsets = [0, 3], sizes = [4, 16], strides = [1, 1]} : vector<4x24xf32> to vector<4x16xf32>
    %9 = vector.extract_strided_slice %4 {offsets = [0, 4], sizes = [4, 16], strides = [1, 1]} : vector<4x24xf32> to vector<4x16xf32>
    %10 = vector.extract_strided_slice %4 {offsets = [0, 5], sizes = [4, 16], strides = [1, 1]} : vector<4x24xf32> to vector<4x16xf32>
    %11 = vector.extract_strided_slice %4 {offsets = [0, 6], sizes = [4, 16], strides = [1, 1]} : vector<4x24xf32> to vector<4x16xf32>
    %12 = vector.extract_strided_slice %4 {offsets = [0, 7], sizes = [4, 16], strides = [1, 1]} : vector<4x24xf32> to vector<4x16xf32>
    %13 = vector.extract_strided_slice %4 {offsets = [0, 8], sizes = [4, 16], strides = [1, 1]} : vector<4x24xf32> to vector<4x16xf32>
    %14 = tpu.concatenate %5, %6, %7, %8, %9, %10, %11, %12, %13 in 0 : vector<4x16xf32>, vector<4x16xf32>, vector<4x16xf32>, vector<4x16xf32>, vector<4x16xf32>, vector<4x16xf32>, vector<4x16xf32>, vector<4x16xf32>, vector<4x16xf32> -> vector<36x16xf32>
    %c0_2 = arith.constant 0 : index
    %c0_3 = arith.constant 0 : index
    %15 = vector.load %arg2[%c0_2, %c0_3] : memref<8x36xf32, #tpu.memory_space<vmem>>, vector<8x36xf32>
    %cst = arith.constant dense<0.000000e+00> : vector<8x16xf32>
    %16 = tpu.matmul %15, %14, %cst {dimension_numbers = #tpu.dot_dimension_numbers<[1], [0], [0], [1], [0, 0, 1, 1], [], []>} : vector<8x36xf32>, vector<36x16xf32>, vector<8x16xf32> -> vector<8x16xf32>
    %c0_4 = arith.constant 0 : index
    %c0_5 = arith.constant 0 : index
    %17 = vector.load %arg3[%c0_4, %c0_5] : memref<8x1xf32, #tpu.memory_space<vmem>>, vector<8x1xf32>
    %18 = vector.broadcast %17 : vector<8x1xf32> to vector<8x16xf32>
    %19 = arith.addf %16, %18 : vector<8x16xf32>
    %c0_6 = arith.constant 0 : index
    %c0_7 = arith.constant 0 : index
    %c0_8 = arith.constant 0 : index
    %20 = vector.load %arg4[%c0_6, %c0_7, %c0_8] : memref<1x8x16xf32, #tpu.memory_space<vmem>>, vector<1x8x16xf32>
    %21 = vector.shape_cast %20 : vector<1x8x16xf32> to vector<8x16xf32>
    %22 = vector.shape_cast %19 : vector<8x16xf32> to vector<1x8x16xf32>
    tpu.vector_store %arg4[%c0_6, %c0_7, %c0_8], %22 {strides = array<i32>} : memref<1x8x16xf32, #tpu.memory_space<vmem>>, vector<1x8x16xf32>,
    return
  }
  func.func @transform_0(%arg0: i32) -> (i32, i32, i32) {
    %c0_i32 = arith.constant 0 : i32
    %c0_i32_0 = arith.constant 0 : i32
    %c0_i32_1 = arith.constant 0 : i32
    return %arg0, %c0_i32, %c0_i32_0 : i32, i32, i32
  }
  func.func @transform_1(%arg0: i32) -> (i32, i32) {
    %c0_i32 = arith.constant 0 : i32
    %c0_i32_0 = arith.constant 0 : i32
    %c0_i32_1 = arith.constant 0 : i32
    return %c0_i32, %c0_i32_0 : i32, i32
  }
  func.func @transform_2(%arg0: i32) -> (i32, i32) {
    %c0_i32 = arith.constant 0 : i32
    %c0_i32_0 = arith.constant 0 : i32
    %c0_i32_1 = arith.constant 0 : i32
    return %c0_i32, %c0_i32_0 : i32, i32
  }
  func.func @transform_3(%arg0: i32) -> (i32, i32, i32) {
    %c0_i32 = arith.constant 0 : i32
    %c0_i32_0 = arith.constant 0 : i32
    %c0_i32_1 = arith.constant 0 : i32
    return %arg0, %c0_i32, %c0_i32_0 : i32, i32, i32
  }
}

</mosaic_0001>

<bundles_post_ra>
// kernel: tpu_custom_call.1
= control target key start
LH: loop header
LB: loop body
LE: loop exit
PB: predicated region body
PF: predicated region fallthrough
CT: control target
= control target key end

     0   :  { %8 = vsyncpa [#allocation3], 0  ;;  %s776_s0 = inlined_call_operand.vmem [shape: f32[2,4,16], index: 0, kind: input, shape index: {}]   ;;  %s777_s1 = inlined_call_operand.hbm [shape: f32[8,36], index: 1, kind: input, shape index: {}]   ;;  %s778_s2 = inlined_call_operand.vmem [shape: f32[8,1], index: 2, kind: input, shape index: {}]   ;;  %s779_s3 = inlined_call_operand.hbm [shape: f32[2,8,16], index: 3, kind: output, shape index: {}]  }
   0x1   :  { %9 = vsyncpa [#allocation4], 0 }
   0x2   :  { %11 = vsyncpa [#allocation4 + $0x1], 0  ;;  %s633_s12 = smov 0   ;;  %s635_s13 = smov 0  }
   0x3   :  { %s637_s14 = smov 0   ;;  %s639_s15 = smov 0  }
   0x4 LB: > { %s654_s16 = sadd.s32 4294967295, %s594_s15   ;;  %s394_s17 = sadd.s32 4294967294, %s594_s15   ;;  %s594_s15 = sphi %s639_s15, %s795_s15   ;;  %s590_s14 = sphi %s637_s14, %s794_s14   ;;  %s586_s13 = sphi %s635_s13, %s793_s13   ;;  %s582_s12 = sphi %s633_s12, %s792_s12  }
   0x5   : > { %s658_s18 = sadd.s32 1, %s594_s15   ;;  %s92_s19 = sadd.s32 1, %s590_s14 }
   0x6   : > { %s89_s20 = ssub.s32 %s594_s15, %s658_s18  ;;  %p102_p0 = scmp.ne.s32.totalorder %s590_s14, %s586_s13 }
   0x7   : > { %p90_p1 = scmp.eq.s32.totalorder %s89_s20, 0  ;;  %p103_p2 = scmp.eq.s32.totalorder %s654_s16, 1 }
   0x8   : > { %p108_p3 = scmp.ne.s32.totalorder %s586_s13, %s582_s12  ;;  %p109_p4 = scmp.eq.s32.totalorder %s394_s17, 1 }
   0x9   : > { %s669_s21 = scalar_select %p90_p1, %s590_s14, %s92_s19  }
   0xa   : > { %p671_p5 = por %p103_p2, %p102_p0  ;;  %p675_p6 = por %p109_p4, %p108_p3 }
   0xb   : > { %p395_p7 = scmp.ge.s32.totalorder %s594_s15, 1  ;;  %p116_p8 = scmp.lt.s32.totalorder %s594_s15, 3 }
   0xc   : > { %s783_s22 = scalar_select %p671_p5, 1, 0 }
   0xd   : > { %s784_s23 = scalar_select %p675_p6, 1, 0 }
   0xe   : > { %p780_p9 = scmp.eq.s32.totalorder %s654_s16, 0  ;;  %p682_p10 = pnand %p395_p7, %p116_p8 }
   0xf   : > { %s596_s25 = smov [#allocation2]   ;;  %s500_s30 = scalar_lea.hbm %s777_s1, 128 }
  0x10   : > { %s785_s24 = scalar_select %p682_p10, 1, 0 }
  0x11   : > { %s129_s26 = sshll.u32 %s596_s25, 4  ;;  %p439_p11 = pneg %p682_p10  ;;  %s130_s26 = int_to_ptr.vmem [resolvable:$true] %s129_s26 }
  0x12   : > { %p501_p13 = scmp.ne.s32.totalorder %s777_s1, %s500_s30  ;;  %p507_p3 = scmp.lt.u32.totalorder %s500_s30, %s777_s1 }
  0x13   : > { %p690_p12 = pnand %p780_p9, %p439_p11 }
  0x15   : > { %p502_p0 = pneg %p690_p12 }
  0x17   : > { %p503_p1 = pnand %p502_p0, %p501_p13 }
  0x19   : > { %p504_p2 = pneg %p503_p1 }
  0x1b   : > { %p509_p4 = pnand %p507_p3, %p504_p2 }
  0x1d   : > { %512 = shalt.err (!%p509_p4)
}
  0x1e   : > { %s513_s8 = scalar_lea.vmem %s130_s26, 128  ;;  %p521_p9 = scmp.lt.s32.totalorder %s130_s26, %s130_s26 }
  0x1f   : > { %p514_p7 = scmp.ne.s32.totalorder %s130_s26, %s513_s8  ;;  %p522_p6 = scmp.lt.s32.totalorder %s513_s8, %s513_s8 }
  0x21   : > { %p516_p8 = pnand %p514_p7, %p502_p0  ;;  %p523_p5 = por %p522_p6, %p521_p9 }
  0x23   : > { %p517_p11 = pneg %p516_p8 }
  0x25   : > { %p524_p10 = pnand %p523_p5, %p517_p11 }
  0x27   : > { %527 = shalt.err (!%p524_p10)
}
  0x28   : > { %442 = dma.hbm_to_vmem [thread:$0]  (!%p690_p12), %s777_s1, 128, %s130_s26, [#allocation3]  }
  0x29   : > { %p787_p13 = scmp.ne.s32.totalorder %s785_s24, 0 }
  0x2a   : > { %p788_p1 = scmp.eq.s32.totalorder (!%p787_p13), %s654_s16, 0 }
  0x2b   : > { %152 = sbr.rel (%p787_p13) target bundleno = 544 (0x220), region = 32 }
  0x32   : > { %573 = dma.done.wait (%p788_p1), [#allocation3], 128   ;;  %p789_p0 = pmov %p788_p1 }
  0x33   : > { %p175_p6 = scmp.lt.s32.totalorder %s654_s16, 1  ;;  %s597_s26 = smov 116   ;;  %vm190_vm0 = vcmask 31744   ;;  %v600_v2 = vmov 0.0|0.0   ;;  %vm192_vm1 = vcmask 162816   ;;  %vm606_vm2 = vmmov 0  }
  0x34   : > { %575 = vsyncadd (%p789_p0), [#allocation3], 4294967168  ;;  %s598_s24 = smov 20   ;;  %s599_s27 = smov 4   ;;  %427 = vmatprep.subr.bf16.mxu0 %v600_v2  ;;  %v607_v8 = vmov 0.0   ;;  %v609_v9 = vmov 0  }
  0x35   : > { %s176_s11 = scalar_select %p175_p6, %s654_s16, 1  ;;  %424 = vmatprep.mubr.msk.f32.mxu0 %vm606_vm2, %v607_v8  ;;  %499 = vset.pattern.permute.xlu0 %v609_v9  ;;  %v225_v10 = vld [vmem:[%s778_s2] sm:$0xff]  ;;  %vm219_vm3 = vcmask 1043456   ;;  %vm231_vm4 = vcmask 293888   ;;  %vm307_vm5 = vcmask 130048  }
  0x36   : > { %s601_s28 = smov 126   ;;  %s602_s29 = smov 127   ;;  %498 = vset.pattern.permute.xlu1 %v609_v9  ;;  %v224_v24 = vld [vmem:[#allocation2] sm:$0xff] }
  0x37   : > { %s401_s17 = sshll.u32 %s176_s11, 2  ;;  %s603_s30 = smov 124  }
  0x38   : > { %s178_s25 = scalar_lea.vmem %s776_s0, %s401_s17  ;;  %s604_s4 = smov 125  }
  0x39   : > { %v179_v0 = vld [vmem:[%s178_s25] sm:$0xf]  ;;  %s605_s5 = smov 122   ;;  %s608_s6 = smov 123  }
  0x3a   : > { %181 = vrot.lane.b32.xlu0 %v179_v0, %s597_s26  ;;  %187 = vrot.lane.b32.xlu1 %v179_v0, %s598_s24  ;;  %s610_s7 = smov 120   ;;  %s611_s8 = smov 121  }
  0x3b   : > { %s172_s11 = sand.u32 1, %s586_s13   ;;  %s405_s19 = sshll.u32 %s654_s16, 7 }
  0x3c   : > { %s400_s17 = sshll.u32 %s172_s11, 3  ;;  %p790_p9 = scmp.ne.s32.totalorder %s783_s22, 0 }
  0x3d   : > { %s174_s20 = scalar_lea.vmem [#allocation5], %s400_s17  ;;  %s612_s16 = smov [#allocation5]  }
  0x3e   : > { %184 = vrot.lane.b32.xlu0 %v179_v0, %s599_s27  ;;  %s323_s25 = sshll.u32 %s174_s20, 4  ;;  %s734_s27 = scalar_lea.hbm %s779_s3, %s405_s19  ;;  %s736_s25 = int_to_ptr.vmem [resolvable:$true] %s323_s25 }
  0xac   : > { %v182_v1 = vpop.permute.xlu0 %181  ;;  %v188_v3 = vpop.permute.xlu1 %187 }
  0xb0   : > { %v185_v4 = vpop.permute.xlu0 %184 }
  0xb1   : > { %v191_v5 = vsel %vm190_vm0, %v182_v1, %v185_v4 }
  0xb2   : > { %v193_v6 = vsel %vm192_vm1, %v191_v5, %v188_v3 }
  0xb3   : > { %199 = vrot.lane.b32.xlu0 %v193_v6, %s601_s28  ;;  %v195_v7 = vrot.slane %v193_v6, 4  ;;  %s310_s28 = scalar_lea.sflag [#allocation4], %s172_s11 }
  0xb5   : > { %196 = vrot.lane.b32.xlu1 %v195_v7, %s602_s29  ;;  %s528_s29 = scalar_lea.vmem %s736_s25, 128 }
  0xb6   : > { %p529_p5 = scmp.ne.s32.totalorder %s736_s25, %s528_s29 }
  0xb7   : > { %205 = vrot.lane.b32.xlu0 %v193_v6, %s603_s30  ;;  %s532_s30 = sshll.u32 %s612_s16, 4  ;;  %s533_s30 = int_to_ptr.vmem [resolvable:$false] %s532_s30 }
  0xb8   : > { %p530_p10 = pnand %p529_p5, %p790_p9  ;;  %p535_p2 = scmp.lt.s32.totalorder %s736_s25, %s533_s30 }
  0xb9   : > { %202 = vrot.lane.b32.xlu1 %v195_v7, %s604_s4  ;;  %s534_s4 = scalar_lea.vmem %s533_s30, 256 }
  0xba   : > { %p531_p12 = pneg %p530_p10  ;;  %p536_p3 = scmp.lt.s32.totalorder %s534_s4, %s528_s29 }
  0xbb   : > { %211 = vrot.lane.b32.xlu0 %v193_v6, %s605_s5 }
  0xbc   : > { %p537_p4 = por %p536_p3, %p535_p2 }
  0xbd   : > { %208 = vrot.lane.b32.xlu1 %v195_v7, %s608_s6 }
  0xbe   : > { %p538_p7 = pnand %p537_p4, %p531_p12 }
  0xbf   : > { %217 = vrot.lane.b32.xlu0 %v193_v6, %s610_s7 }
  0xc1   : > { %214 = vrot.lane.b32.xlu1 %v195_v7, %s611_s8 }
  0xc5   : > { %228 = vperm.xlu1 %498, %v225_v10  }
 0x125   : > { %v200_v11 = vpop.permute.xlu0 %199 }
 0x127   : > { %v197_v12 = vpop.permute.xlu1 %196 }
 0x128   : > { %v220_v14 = vsel %vm219_vm3, %v193_v6, %v197_v12 }
 0x129   : > { %v206_v16 = vpop.permute.xlu0 %205 }
 0x12b   : > { %v203_v13 = vpop.permute.xlu1 %202 }
 0x12c   : > { %v221_v15 = vsel %vm219_vm3, %v200_v11, %v203_v13 }
 0x12d   : > { %v428_v17 = vpack.c.bf16 %v221_v15, %v220_v14  ;;  %v212_v19 = vpop.permute.xlu0 %211 }
 0x12f   : > { %429 = vmatpush3.bf16.msra.mxu0 %v428_v17  ;;  %v209_v18 = vpop.permute.xlu1 %208 }
 0x130   : > { %430 = vmatprep.subr.bf16.mxu0 %v600_v2  ;;  %v222_v21 = vsel %vm219_vm3, %v206_v16, %v209_v18 }
 0x131   : > { %v218_v25 = vpop.permute.xlu0 %217 }
 0x133   : > { %v215_v20 = vpop.permute.xlu1 %214 }
 0x134   : > { %v223_v22 = vsel %vm219_vm3, %v212_v19, %v215_v20 }
 0x135   : > { %v431_v23 = vpack.c.bf16 %v223_v22, %v222_v21 }
 0x137   : > { %432 = vmatpush3.bf16.msra.mxu0 %v431_v23 }
 0x138   : > { %422 = vmatprep.subr.mxu0 %v607_v8 }
 0x13b   : > { %423 = vmatpush3.msk.msra.mxu0 %vm219_vm3, %v218_v25 }
 0x13c   : > { %425 = vmatmul.mubr.msk.f32.vlgmr.msra.gmra.mrb[0].mxu0 %vm231_vm4, %v224_v24 }
 0x144   : > { %v229_v26 = vpop.permute.xlu1 %228 }
 0x20f   : > { %v303_v27 = vpop.f32.mrb[0].mxu0 }
 0x210   : > { %v304_v28 = vadd.f32 %v303_v27, %v229_v26  ;;  %v426_v29 = vpop.f32.mrb[1].mxu0 }
 0x212   : > { %308 = vst.msk [vmem:[%s174_s20] sm:$0xff] %vm307_vm5, %v304_v28 }
 0x213   : > { %541 = shalt.err (!%p538_p7)
}
 0x214   : > { %s542_s5 = scalar_lea.hbm %s734_s27, 128  ;;  %s546_s8 = scalar_lea.hbm %s779_s3, 256 }
 0x215   : > { %p543_p8 = scmp.ne.s32.totalorder %s734_s27, %s542_s5  ;;  %p547_p1 = scmp.lt.u32.totalorder %s734_s27, %s779_s3 }
 0x216   : > { %p548_p0 = scmp.lt.u32.totalorder %s546_s8, %s542_s5  ;;  %p550_p5 = scmp.lt.u32.totalorder %s542_s5, %s734_s27 }
 0x217   : > { %p544_p11 = pnand %p543_p8, %p790_p9 }
 0x218   : > { %p549_p6 = por %p548_p0, %p547_p1 }
 0x219   : > { %p545_p13 = pneg %p544_p11 }
 0x21a   : > { %p551_p10 = por %p550_p5, %p549_p6 }
 0x21c   : > { %p552_p12 = pnand %p551_p10, %p545_p13 }
 0x21e   : > { %555 = shalt.err (!%p552_p12)
}
 0x21f   : > { %437 = dma.vmem_to_hbm [thread:$0]  (%p790_p9), %s736_s25, 128, %s734_s27, %s310_s28  }
 0x220 PF: > { %p449_p2 = scmp.ge.s32.totalorder %s594_s15, 2  ;;  %s335_s11 = sand.u32 1, %s582_s12  }
 0x221   : > { %p791_p3 = scmp.ne.s32.totalorder %s784_s23, 0  ;;  %s336_s17 = scalar_lea.sflag [#allocation4], %s335_s11 }
 0x223   : > { %p444_p4 = pnand %p449_p2, %p791_p3 }
 0x225   : > { %577 = dma.done.wait (!%p444_p4), %s336_s17, 128  }
 0x226   : > { %579 = vsyncadd (!%p444_p4), %s336_s17, 4294967168  ;;  %p14_p7 = scmp.ge.s32.totalorder %s658_s18, 4   ;;  %s792_s12 = smov %s586_s13 }
 0x227   : > { %s793_s13 = smov %s590_s14  ;;  %s794_s14 = smov %s669_s21 }
 0x228   : > { %s795_s15 = smov %s658_s18  ;;  %16 = sbr.rel (!%p14_p7) target bundleno = 4 (0x4), region = 72 }
 0x22f   :  { %341 = vsyncpa [#allocation3], 1 }
 0x230   :  { %343 = vsyncpa [#allocation3 + $0x1], 1 }
 0x231   :  { %344 = vsyncpa [#allocation4], 1 }
 0x232   :  { %346 = vsyncpa [#allocation4 + $0x1], 1 }

</bundles_post_ra>
